<compile_context>
chip_gen: v6e
topology: v6e:2x2x1
jax: 0.10.0
libtpu: 0.0.40
codegen_flags: <defaults>
</compile_context>

<pallas_src>
from functools import partial
from typing import Any, Dict, List, Optional

import numpy as np

import jax
import jax.numpy as jnp
from jax.experimental import pallas as pl
from jax.experimental.pallas import tpu as pltpu

NUM_FINGER_JOINTS = 15  # MANO finger joints (excluding the root/wrist)


class RotMatrixManolayer:
    """Deterministic stand-in for the rotation-matrix MANO layer.

    The base stage only stores it; its mesh regression is never invoked by the
    abstract forward, so we only keep a deterministic joint template.
    """

    def __init__(self) -> None:
        self.template_joints = (
            jnp.arange(16 * 3, dtype=jnp.float32).reshape(16, 3) / 100.0
        )


def _round_up(x: int, m: int) -> int:
    return ((x + m - 1) // m) * m


# --------------------------------------------------------------------------
# Pallas kernel:  out[i, b, x] = sum_j root[b, 3*i + j] * fing[j, b, x]
#   root_ref : (TB, 9)      — 3x3 root rmt flattened onto lanes
#   fing_ref : (3, TB, Xp)  — contraction index j leads, batch on sublanes,
#                             flattened (n, q, k) on lanes
#   out_ref  : (3, TB, Xp)  — output row index i leads
# K = 3 is fully unrolled into broadcast-FMAs (pure VPU; MXU would be <3%
# utilized).  The r column slices are (TB, 1) lane-broadcasts.
# --------------------------------------------------------------------------
def _compose_rmt_kernel(root_ref, fing_ref, out_ref):
    r = root_ref[...].astype(jnp.float32)          # (TB, 9)
    f0 = fing_ref[0].astype(jnp.float32)           # (TB, Xp)
    f1 = fing_ref[1].astype(jnp.float32)
    f2 = fing_ref[2].astype(jnp.float32)
    for i in range(3):                             # unrolled at trace time
        acc = (r[:, 3 * i + 0:3 * i + 1] * f0
               + r[:, 3 * i + 1:3 * i + 2] * f1
               + r[:, 3 * i + 2:3 * i + 3] * f2)
        out_ref[i] = acc.astype(out_ref.dtype)


# VMEM sizing: keep the double-buffered fing+out blocks under ~20 MiB and set
# the scoped-VMEM limit explicitly to 32 MiB — safe on every generation
# (v7x: 64 MiB physical / 32 MiB default; v6e: 128/32; v5e: 128/16).
_VMEM_BUDGET_BYTES = 20 * 1024 * 1024
_VMEM_LIMIT_BYTES = 32 * 1024 * 1024
_MIN_BLOCK_BYTES = 512 * 1024


def _pick_tb(B: int, Xp: int, io_itemsize: int) -> int:
    """Batch-tile size: multiple of 8, VMEM-budgeted, ~8 pipelined steps."""
    Bp8 = _round_up(max(B, 1), 8)
    # fing + out blocks, each double-buffered by the BlockSpec pipeline.
    bytes_per_row = 2 * 2 * 3 * Xp * io_itemsize
    tb_vmem = max(8, (_VMEM_BUDGET_BYTES // max(bytes_per_row, 1)) // 8 * 8)
    # Aim for ~8 grid steps when the batch allows (DMA/compute overlap; the
    # "parallel" batch axis also shards across v7x's two TensorCores)...
    tb_steps = max(8, _round_up(pl.cdiv(Bp8, 8), 8))
    # ...but never shrink a fing block below ~512 KiB (per-step overhead).
    tb_floor = max(8, _round_up(
        max(_MIN_BLOCK_BYTES // max(3 * Xp * io_itemsize, 1), 1), 8))
    # TODO(synk): extremely large N (Xp such that a TB=8 block exceeds VMEM)
    # would additionally need lane-axis tiling of Xp; not required here.
    return min(tb_vmem, max(tb_steps, tb_floor), Bp8)


@partial(jax.jit, static_argnames=("io_dtype",))
def _compose_pallas(root_rmt: jnp.ndarray,
                    amb_finger_rmt: jnp.ndarray,
                    io_dtype=jnp.float32) -> jnp.ndarray:
    """out[b, n, q] = root_rmt[b, 0] @ amb_finger_rmt[b, n, q] via Pallas."""
    B, N, Q = amb_finger_rmt.shape[0], amb_finger_rmt.shape[1], amb_finger_rmt.shape[2]
    X = N * Q * 3
    Xp = _round_up(X, 128)                         # lane-dense width
    io_itemsize = int(np.dtype(io_dtype).itemsize)

    TB = _pick_tb(B, Xp, io_itemsize)
    Bp = _round_up(B, TB)
    grid_b = Bp // TB

    # root → (Bp, 9) f32; a (TB,3,3) block would pad each 3x3 to a full
    # (8,128) tile (~100x the real data), (TB,9) is ~8x cheaper.
    root = root_rmt[:, 0].astype(jnp.float32).reshape(B, 9)
    # fing → (3, Bp, Xp): contraction index j leads, batch on sublanes,
    # flattened (n, q, k) on lanes.  The transpose + pad fuse into a single
    # copy under this jit; ideally upstream producers emit this layout
    # directly so the extra HBM round-trip of the largest tensor disappears.
    fing = jnp.transpose(amb_finger_rmt.astype(io_dtype),
                         (3, 0, 1, 2, 4)).reshape(3, B, X)
    # Zero-padded lanes/batches keep every store a dense unmasked `vst`; the
    # padded outputs are exactly 0 (r * 0) — they would only become NaN if
    # root itself carried NaN/Inf — and are sliced off below.
    if Xp != X or Bp != B:
        fing = jnp.pad(fing, ((0, 0), (0, Bp - B), (0, Xp - X)))
    if Bp != B:
        root = jnp.pad(root, ((0, Bp - B), (0, 0)))

    cost = pl.CostEstimate(
        flops=15 * B * X,                                   # 3 mul + 2 add / out elem
        transcendentals=0,
        bytes_accessed=2 * 3 * Bp * Xp * io_itemsize + Bp * 9 * 4,
    )

    out = pl.pallas_call(
        _compose_rmt_kernel,
        out_shape=jax.ShapeDtypeStruct((3, Bp, Xp), io_dtype),
        grid=(grid_b,),
        in_specs=[
            pl.BlockSpec((TB, 9), lambda i: (i, 0)),        # tiny root block
            pl.BlockSpec((3, TB, Xp), lambda i: (0, i, 0)),
        ],
        out_specs=pl.BlockSpec((3, TB, Xp), lambda i: (0, i, 0)),
        compiler_params=pltpu.CompilerParams(
            dimension_semantics=("parallel",),              # megacore on v7x
            vmem_limit_bytes=_VMEM_LIMIT_BYTES,
        ),
        cost_estimate=cost,
    )(root, fing)

    # (3(i), B, N, Q, 3(k)) -> (B, N, Q, 3(i), 3(k)); fused inside this jit.
    out = out[:, :B, :X].reshape(3, B, N, Q, 3)
    return jnp.transpose(out, (1, 2, 3, 0, 4)).astype(amb_finger_rmt.dtype)


@jax.jit
def _compose_einsum(root_rmt: jnp.ndarray,
                    amb_finger_rmt: jnp.ndarray) -> jnp.ndarray:
    return jnp.einsum("bij,bnqjk->bnqik", root_rmt[:, 0], amb_finger_rmt)


def compose_root_finger_rmt(root_rmt: jnp.ndarray,
                            amb_finger_rmt: jnp.ndarray,
                            use_pallas: Optional[bool] = None,
                            io_dtype=jnp.float32) -> jnp.ndarray:
    """Size-gated dispatcher: fused einsum for tiny inputs, Pallas otherwise."""
    if use_pallas is None:
        B, N, Q = amb_finger_rmt.shape[:3]
        # Below ~1 MiB of finger data the fixed dispatch + layout plumbing
        # dominate and a fused einsum wins; above it the Pallas path runs at
        # the HBM roofline.
        use_pallas = (B * N * Q * 9 * 4) >= (1 << 20)
    if not use_pallas:
        return _compose_einsum(root_rmt, amb_finger_rmt)
    # NOTE: pass io_dtype=jnp.bfloat16 for very large B*N (halves HBM traffic;
    # compute stays f32 in-kernel) — rotation matrices then carry ~3 digits.
    return _compose_pallas(root_rmt, amb_finger_rmt, io_dtype=io_dtype)


class AmbHandStageBase:
    """JAX mirror of the PyTorch base stage."""

    def __init__(self, num_samples: int, manolayer: RotMatrixManolayer, **kwargs: Any) -> None:
        self.num_samples = num_samples
        self.rManolayer = manolayer

    def compose_gt_rmt(self, batch_data: Dict, use_pallas: Optional[bool] = None) -> Dict:
        """Shared base-contract compute (used by derived stages), kernelized."""
        global_rmt = compose_root_finger_rmt(batch_data["root_rmt"],
                                             batch_data["amb_finger_rmt"],
                                             use_pallas=use_pallas)
        return {"gt_global_amb_rmt": global_rmt,
                "num_samples": self.num_samples}

    def forward(self, image_features: List, batch_data: Dict) -> Dict:
        # TODO(synk): base forward is abstract in the reference module
        # (raises NotImplementedError); semantics preserved exactly.
        raise NotImplementedError("Not Implemented")


def _random_rotation_matrices(key, shape_prefix):
    """Deterministic proper-ish rotation matrices via QR of random normals."""
    m = jax.random.normal(key, shape_prefix + (3, 3), dtype=jnp.float32)
    q, r = jnp.linalg.qr(m)
    d = jnp.sign(jnp.diagonal(r, axis1=-2, axis2=-1))
    return q * d[..., None, :]


if __name__ == "__main__":
    key = jax.random.PRNGKey(0)
    k_img, k_root, k_fing = jax.random.split(key, 3)

    B, N_gt, H, W = 2, 4, 16, 16

    batch_data = {
        "images": jax.random.normal(k_img, (B, 3, H, W), dtype=jnp.float32),   # NCHW
        "root_rmt": _random_rotation_matrices(k_root, (B, 1)),                  # [B,1,3,3]
        "amb_finger_rmt": _random_rotation_matrices(
            k_fing, (B, N_gt, NUM_FINGER_JOINTS)),                              # [B,N,15,3,3]
    }
    # backbone feature maps list (contract only; unused by the abstract forward)
    image_features = [jax.random.normal(k_img, (B, 8, H // 4, W // 4), dtype=jnp.float32)]

    stage = AmbHandStageBase(num_samples=8, manolayer=RotMatrixManolayer())

    # Force the Pallas path: at this demo scale the auto size-gate would pick
    # the fused-einsum path, but we want to exercise the kernel here.
    preds = stage.compose_gt_rmt(batch_data, use_pallas=True)
    out = jax.block_until_ready(preds["gt_global_amb_rmt"])

    # reference check against plain-JAX einsum
    ref = jnp.einsum("bij,bnqjk->bnqik",
                     batch_data["root_rmt"][:, 0], batch_data["amb_finger_rmt"])
    assert out.shape == (B, N_gt, NUM_FINGER_JOINTS, 3, 3)
    assert jnp.allclose(out, ref, atol=1e-5, rtol=1e-5)

    print("KERNEL_OK")
</pallas_src>

<mosaic_0001>
module attributes {stable_mosaic.version = 11 : i64} {
  func.func @_compose_rmt_kernel(%arg0: i32, %arg1: memref<8x9xf32, #tpu.memory_space<vmem>>, %arg2: memref<3x8x256xf32, #tpu.memory_space<vmem>>, %arg3: memref<3x8x256xf32, #tpu.memory_space<vmem>>) attributes {dimension_semantics = [#tpu.dimension_semantics<parallel>], iteration_bounds = array<i64: 1>, scalar_prefetch = 0 : i64, scratch_operands = 0 : i64, tpu.core_type = #tpu.core_type<tc>, window_params = [{transform_indices = @transform_0, window_bounds = array<i64: 8, 9>}, {transform_indices = @transform_1, window_bounds = array<i64: 3, 8, 256>}, {transform_indices = @transform_2, window_bounds = array<i64: 3, 8, 256>}]} {
    %c0 = arith.constant 0 : index
    %c0_0 = arith.constant 0 : index
    %0 = vector.load %arg1[%c0, %c0_0] : memref<8x9xf32, #tpu.memory_space<vmem>>, vector<8x9xf32>
    %c0_1 = arith.constant 0 : index
    %c0_2 = arith.constant 0 : index
    %c0_3 = arith.constant 0 : index
    %1 = vector.load %arg2[%c0_1, %c0_2, %c0_3] : memref<3x8x256xf32, #tpu.memory_space<vmem>>, vector<1x8x256xf32>
    %2 = vector.shape_cast %1 : vector<1x8x256xf32> to vector<8x256xf32>
    %c1 = arith.constant 1 : index
    %c0_4 = arith.constant 0 : index
    %c0_5 = arith.constant 0 : index
    %3 = vector.load %arg2[%c1, %c0_4, %c0_5] : memref<3x8x256xf32, #tpu.memory_space<vmem>>, vector<1x8x256xf32>
    %4 = vector.shape_cast %3 : vector<1x8x256xf32> to vector<8x256xf32>
    %c2 = arith.constant 2 : index
    %c0_6 = arith.constant 0 : index
    %c0_7 = arith.constant 0 : index
    %5 = vector.load %arg2[%c2, %c0_6, %c0_7] : memref<3x8x256xf32, #tpu.memory_space<vmem>>, vector<1x8x256xf32>
    %6 = vector.shape_cast %5 : vector<1x8x256xf32> to vector<8x256xf32>
    %7 = vector.extract_strided_slice %0 {offsets = [0, 0], sizes = [8, 1], strides = [1, 1]} : vector<8x9xf32> to vector<8x1xf32>
    %8 = vector.broadcast %7 : vector<8x1xf32> to vector<8x256xf32>
    %9 = arith.mulf %8, %2 : vector<8x256xf32>
    %10 = vector.extract_strided_slice %0 {offsets = [0, 1], sizes = [8, 1], strides = [1, 1]} : vector<8x9xf32> to vector<8x1xf32>
    %11 = vector.broadcast %10 : vector<8x1xf32> to vector<8x256xf32>
    %12 = arith.mulf %11, %4 : vector<8x256xf32>
    %13 = arith.addf %9, %12 : vector<8x256xf32>
    %14 = vector.extract_strided_slice %0 {offsets = [0, 2], sizes = [8, 1], strides = [1, 1]} : vector<8x9xf32> to vector<8x1xf32>
    %15 = vector.broadcast %14 : vector<8x1xf32> to vector<8x256xf32>
    %16 = arith.mulf %15, %6 : vector<8x256xf32>
    %17 = arith.addf %13, %16 : vector<8x256xf32>
    %c0_8 = arith.constant 0 : index
    %c0_9 = arith.constant 0 : index
    %c0_10 = arith.constant 0 : index
    %18 = vector.load %arg3[%c0_8, %c0_9, %c0_10] : memref<3x8x256xf32, #tpu.memory_space<vmem>>, vector<1x8x256xf32>
    %19 = vector.shape_cast %18 : vector<1x8x256xf32> to vector<8x256xf32>
    %20 = vector.shape_cast %17 : vector<8x256xf32> to vector<1x8x256xf32>
    tpu.vector_store %arg3[%c0_8, %c0_9, %c0_10], %20 {strides = array<i32>} : memref<3x8x256xf32, #tpu.memory_space<vmem>>, vector<1x8x256xf32>,
    %21 = vector.extract_strided_slice %0 {offsets = [0, 3], sizes = [8, 1], strides = [1, 1]} : vector<8x9xf32> to vector<8x1xf32>
    %22 = vector.broadcast %21 : vector<8x1xf32> to vector<8x256xf32>
    %23 = arith.mulf %22, %2 : vector<8x256xf32>
    %24 = vector.extract_strided_slice %0 {offsets = [0, 4], sizes = [8, 1], strides = [1, 1]} : vector<8x9xf32> to vector<8x1xf32>
    %25 = vector.broadcast %24 : vector<8x1xf32> to vector<8x256xf32>
    %26 = arith.mulf %25, %4 : vector<8x256xf32>
    %27 = arith.addf %23, %26 : vector<8x256xf32>
    %28 = vector.extract_strided_slice %0 {offsets = [0, 5], sizes = [8, 1], strides = [1, 1]} : vector<8x9xf32> to vector<8x1xf32>
    %29 = vector.broadcast %28 : vector<8x1xf32> to vector<8x256xf32>
    %30 = arith.mulf %29, %6 : vector<8x256xf32>
    %31 = arith.addf %27, %30 : vector<8x256xf32>
    %c1_11 = arith.constant 1 : index
    %c0_12 = arith.constant 0 : index
    %c0_13 = arith.constant 0 : index
    %32 = vector.load %arg3[%c1_11, %c0_12, %c0_13] : memref<3x8x256xf32, #tpu.memory_space<vmem>>, vector<1x8x256xf32>
    %33 = vector.shape_cast %32 : vector<1x8x256xf32> to vector<8x256xf32>
    %34 = vector.shape_cast %31 : vector<8x256xf32> to vector<1x8x256xf32>
    tpu.vector_store %arg3[%c1_11, %c0_12, %c0_13], %34 {strides = array<i32>} : memref<3x8x256xf32, #tpu.memory_space<vmem>>, vector<1x8x256xf32>,
    %35 = vector.extract_strided_slice %0 {offsets = [0, 6], sizes = [8, 1], strides = [1, 1]} : vector<8x9xf32> to vector<8x1xf32>
    %36 = vector.broadcast %35 : vector<8x1xf32> to vector<8x256xf32>
    %37 = arith.mulf %36, %2 : vector<8x256xf32>
    %38 = vector.extract_strided_slice %0 {offsets = [0, 7], sizes = [8, 1], strides = [1, 1]} : vector<8x9xf32> to vector<8x1xf32>
    %39 = vector.broadcast %38 : vector<8x1xf32> to vector<8x256xf32>
    %40 = arith.mulf %39, %4 : vector<8x256xf32>
    %41 = arith.addf %37, %40 : vector<8x256xf32>
    %42 = vector.extract_strided_slice %0 {offsets = [0, 8], sizes = [8, 1], strides = [1, 1]} : vector<8x9xf32> to vector<8x1xf32>
    %43 = vector.broadcast %42 : vector<8x1xf32> to vector<8x256xf32>
    %44 = arith.mulf %43, %6 : vector<8x256xf32>
    %45 = arith.addf %41, %44 : vector<8x256xf32>
    %c2_14 = arith.constant 2 : index
    %c0_15 = arith.constant 0 : index
    %c0_16 = arith.constant 0 : index
    %46 = vector.load %arg3[%c2_14, %c0_15, %c0_16] : memref<3x8x256xf32, #tpu.memory_space<vmem>>, vector<1x8x256xf32>
    %47 = vector.shape_cast %46 : vector<1x8x256xf32> to vector<8x256xf32>
    %48 = vector.shape_cast %45 : vector<8x256xf32> to vector<1x8x256xf32>
    tpu.vector_store %arg3[%c2_14, %c0_15, %c0_16], %48 {strides = array<i32>} : memref<3x8x256xf32, #tpu.memory_space<vmem>>, vector<1x8x256xf32>,
    return
  }
  func.func @transform_0(%arg0: i32) -> (i32, i32) {
    %c0_i32 = arith.constant 0 : i32
    %c0_i32_0 = arith.constant 0 : i32
    return %arg0, %c0_i32 : i32, i32
  }
  func.func @transform_1(%arg0: i32) -> (i32, i32, i32) {
    %c0_i32 = arith.constant 0 : i32
    %c0_i32_0 = arith.constant 0 : i32
    %c0_i32_1 = arith.constant 0 : i32
    return %c0_i32, %arg0, %c0_i32_0 : i32, i32, i32
  }
  func.func @transform_2(%arg0: i32) -> (i32, i32, i32) {
    %c0_i32 = arith.constant 0 : i32
    %c0_i32_0 = arith.constant 0 : i32
    %c0_i32_1 = arith.constant 0 : i32
    return %c0_i32, %arg0, %c0_i32_0 : i32, i32, i32
  }
}

</mosaic_0001>

<bundles_post_ra>
// kernel: squeeze.1
= control target key start
LH: loop header
LB: loop body
LE: loop exit
PB: predicated region body
PF: predicated region fallthrough
CT: control target
= control target key end

     0   :  { %s11_s10 = smov 3  ;;  %vm13_vm0 = vcmask 23552   ;;  %s23_s11 = smov 3  ;;  %vm20_vm1 = vcmask 72752   ;;  %vm27_vm2 = vcmask 48152   ;;  %s61_s0 = inlined_call_operand.vmem [shape: f32[2,3,3], index: 0, kind: input, shape index: {}]   ;;  %s62_s1 = inlined_call_operand.vmem [shape: f32[2,9], index: 1, kind: output, shape index: {}]  }
   0x1   :  { %v37_v0 = vld [vmem:[%s61_s0 + $0x4] sm:$0xf]  ;;  %v9_v1 = vld [vmem:[%s61_s0] sm:$0xf]  ;;  %s16_s0 = smov 3  ;;  %s40_s12 = smov 6  }
   0x2   :  { %8 = vst [vmem:[#allocation1 + $0x8] sm:$0xf] %v37_v0  ;;  %10 = vst [vmem:[#allocation1] sm:$0xf] %v9_v1  ;;  %s41_s13 = smov 3  }
   0x9   :  { %v17_v2 = vld [vmem:[#allocation1 + $0x2] ss:$8 sm:%s16_s0]   ;;  %v12_v3 = vld [vmem:[#allocation1] ss:$8 sm:%s11_s10]   ;;  %v24_v4 = vld [vmem:[#allocation1 + $0x1] ss:$8 sm:%s23_s11]  }
   0xa   :  { %18 = vrot.lane.b32.xlu0 %v17_v2, %s40_s12  ;;  %14 = vst.msk [vmem:[#allocation0] sm:$0x3] %vm13_vm0, %v12_v3  }
   0xe   :  { %25 = vrot.lane.b32.xlu0 %v24_v4, %s41_s13 }
  0x7c   :  { %v19_v5 = vpop.permute.xlu0 %18  }
  0x7d   :  { %21 = vst.msk [vmem:[#allocation0] sm:$0x3] %vm20_vm1, %v19_v5  }
  0x80   :  { %v26_v6 = vpop.permute.xlu0 %25  }
  0x81   :  { %28 = vst.msk [vmem:[#allocation0] sm:$0x3] %vm27_vm2, %v26_v6  }
  0x88   :  { %v33_v7 = vld [vmem:[#allocation0] sm:$0x3] }
  0x89   :  { %36 = vst [vmem:[%s62_s1] sm:$0x3] %v33_v7 }

// kernel: _compose_pallas.1
= control target key start
LH: loop header
LB: loop body
LE: loop exit
PB: predicated region body
PF: predicated region fallthrough
CT: control target
= control target key end

     0   :  { %v125_v0 = vmov 3   ;;  %v126_v1 = vmov 0   ;;  %v127_v3 = vmov 4   ;;  %v128_v4 = vmov 1   ;;  %s188_s0 = inlined_call_operand.vmem [shape: f32[8,9], index: 0, kind: input, shape index: {}]   ;;  %s189_s1 = inlined_call_operand.vmem [shape: f32[3,8,256], index: 1, kind: input, shape index: {}]   ;;  %s190_s2 = inlined_call_operand.vmem [shape: f32[3,8,256], index: 2, kind: output, shape index: {}]  }
   0x1   :  { %118 = vset.pattern.permute.xlu1 %v125_v0  ;;  %116 = vset.pattern.permute.xlu0 %v126_v1  ;;  %v11_v2 = vld [vmem:[%s188_s0] sm:$0xff]  ;;  %v129_v5 = vmov 6   ;;  %v130_v6 = vmov 7   ;;  %v131_v7 = vmov 2   ;;  %v132_v8 = vmov 8   ;;  %v99_v14 = vld [vmem:[%s189_s1 + $0x10] sm:$0xff] }
   0x2   :  { %46 = vperm.xlu1 %118, %v11_v2   ;;  %22 = vperm.xlu0 %116, %v11_v2   ;;  %v133_v9 = vmov 5   ;;  %v100_v15 = vld [vmem:[%s189_s1 + $0x18] sm:$0xff]  ;;  %v12_v16 = vld [vmem:[%s189_s1] sm:$0xff]  ;;  %v13_v17 = vld [vmem:[%s189_s1 + $0x8] sm:$0xff] }
   0x3   :  { %v101_v28 = vld [vmem:[%s189_s1 + $0x20] sm:$0xff]  ;;  %v102_v29 = vld [vmem:[%s189_s1 + $0x28] sm:$0xff] }
   0x6   :  { %119 = vset.pattern.permute.xlu1 %v127_v3  ;;  %117 = vset.pattern.permute.xlu0 %v128_v4 }
   0x7   :  { %52 = vperm.xlu1 %119, %v11_v2   ;;  %28 = vperm.xlu0 %117, %v11_v2  }
   0xb   :  { %120 = vset.pattern.permute.xlu1 %v129_v5  ;;  %121 = vset.pattern.permute.xlu0 %v130_v6 }
   0xc   :  { %71 = vperm.xlu1 %120, %v11_v2   ;;  %77 = vperm.xlu0 %121, %v11_v2  }
  0x10   :  { %122 = vset.pattern.permute.xlu1 %v131_v7  ;;  %124 = vset.pattern.permute.xlu0 %v132_v8 }
  0x11   :  { %36 = vperm.xlu1 %122, %v11_v2   ;;  %85 = vperm.xlu0 %124, %v11_v2  }
  0x15   :  { %123 = vset.pattern.permute.xlu1 %v133_v9 }
  0x16   :  { %60 = vperm.xlu1 %123, %v11_v2  }
  0x7d   :  { %v47_v10 = vpop.permute.xlu1 %46  ;;  %v23_v11 = vpop.permute.xlu0 %22 }
  0x7e   :  { %v25_v18 = vmul.f32 %v23_v11, %v12_v16  ;;  %v26_v19 = vmul.f32 %v23_v11, %v13_v17  ;;  %v49_v46 = vmul.f32 %v47_v10, %v12_v16  ;;  %v50_v47 = vmul.f32 %v47_v10, %v13_v17 }
  0x82   :  { %v53_v12 = vpop.permute.xlu1 %52  ;;  %v29_v13 = vpop.permute.xlu0 %28 }
  0x83   :  { %v31_v20 = vmul.f32 %v99_v14, %v29_v13  ;;  %v32_v21 = vmul.f32 %v100_v15, %v29_v13  ;;  %v55_v40 = vmul.f32 %v99_v14, %v53_v12  ;;  %v56_v41 = vmul.f32 %v100_v15, %v53_v12 }
  0x85   :  { %v33_v30 = vadd.f32 %v31_v20, %v25_v18  ;;  %v34_v31 = vadd.f32 %v32_v21, %v26_v19  ;;  %v57_v49 = vadd.f32 %v55_v40, %v49_v46  ;;  %v58_v50 = vadd.f32 %v56_v41, %v50_v47 }
  0x87   :  { %v72_v22 = vpop.permute.xlu1 %71  ;;  %v78_v23 = vpop.permute.xlu0 %77 }
  0x88   :  { %v74_v24 = vmul.f32 %v72_v22, %v12_v16  ;;  %v75_v25 = vmul.f32 %v72_v22, %v13_v17  ;;  %v80_v26 = vmul.f32 %v99_v14, %v78_v23  ;;  %v81_v27 = vmul.f32 %v100_v15, %v78_v23 }
  0x8a   :  { %v82_v32 = vadd.f32 %v80_v26, %v74_v24  ;;  %v83_v33 = vadd.f32 %v81_v27, %v75_v25 }
  0x8c   :  { %v37_v34 = vpop.permute.xlu1 %36  ;;  %v86_v35 = vpop.permute.xlu0 %85 }
  0x8d   :  { %v39_v36 = vmul.f32 %v101_v28, %v37_v34  ;;  %v40_v37 = vmul.f32 %v102_v29, %v37_v34  ;;  %v88_v38 = vmul.f32 %v101_v28, %v86_v35  ;;  %v89_v39 = vmul.f32 %v102_v29, %v86_v35 }
  0x8f   :  { %v41_v42 = vadd.f32 %v39_v36, %v33_v30  ;;  %v42_v43 = vadd.f32 %v40_v37, %v34_v31  ;;  %v90_v44 = vadd.f32 %v88_v38, %v82_v32  ;;  %v91_v45 = vadd.f32 %v89_v39, %v83_v33 }
  0x91   :  { %43 = vst [vmem:[%s190_s2] sm:$0xff] %v41_v42  ;;  %44 = vst [vmem:[%s190_s2 + $0x8] sm:$0xff] %v42_v43  ;;  %v61_v48 = vpop.permute.xlu1 %60 }
  0x92   :  { %105 = vst [vmem:[%s190_s2 + $0x20] sm:$0xff] %v90_v44  ;;  %106 = vst [vmem:[%s190_s2 + $0x28] sm:$0xff] %v91_v45  ;;  %v63_v51 = vmul.f32 %v101_v28, %v61_v48  ;;  %v64_v52 = vmul.f32 %v102_v29, %v61_v48 }
  0x94   :  { %v65_v53 = vadd.f32 %v63_v51, %v57_v49  ;;  %v66_v54 = vadd.f32 %v64_v52, %v58_v50 }
  0x96   :  { %103 = vst [vmem:[%s190_s2 + $0x10] sm:$0xff] %v65_v53  ;;  %104 = vst [vmem:[%s190_s2 + $0x18] sm:$0xff] %v66_v54 }

</bundles_post_ra>
